<compile_context>
chip_gen: v6e
topology: v6e:2x2x1
jax: 0.10.0
libtpu: 0.0.40
codegen_flags: <defaults>
</compile_context>

<pallas_src>
import functools

import jax
import jax.numpy as jnp
from jax.experimental import pallas as pl
from jax.experimental.pallas import tpu as pltpu


def _trans_op2_kernel(mix_ref,              # SMEM (3,) architecture/mixing weights
                      x_ref,                # VMEM (in_dim, tb)  -- batch on lanes
                      w1_ref, b1_ref,       # VMEM (F, in_dim), (F, 1): fused [lin ; conv ; gate1]
                      mixv_ref,             # VMEM (F, 1): rows = [mix0 | mix1 | 1.0]
                      w2_ref, b2_ref,       # VMEM (out_dim, in_dim), (out_dim, 1): gate linear2
                      out_ref,              # VMEM (out_dim, tb)
                      *, in_dim, out_dim, conv_off, gate_off):
    m2 = mix_ref[2]                          # hoist the scalar SMEM read

    x = x_ref[...]                           # (in_dim, tb)

    # Fused stage 1: [linear ; conv(mid tap) ; gate-linear1] -> one MXU push, one bias add,
    # one relu, then mix0/mix1 folded in with a single (F,1) row-scale multiply.
    y1 = jnp.maximum(
        jnp.dot(w1_ref[...], x, preferred_element_type=jnp.float32) + b1_ref[...], 0.0)
    y1 = y1 * mixv_ref[...]

    # Stage 2 (gate): relu(linear2(relu(linear1(x)) * x)); gate rows of y1 were scaled by 1.0.
    g = y1[gate_off:gate_off + in_dim, :] * x
    y_gate = jnp.maximum(
        jnp.dot(w2_ref[...], g, preferred_element_type=jnp.float32) + b2_ref[...], 0.0)

    out_ref[...] = (y1[:out_dim, :]
                    + y1[conv_off:conv_off + out_dim, :]
                    + m2 * y_gate)


def _round8(n):
    return -(-n // 8) * 8


def prepack_params(params):
    """One-time weight packing (hoisted out of the per-call path)."""
    out_dim, in_dim = params["w_lin"].shape
    lin_rows, conv_rows, gate_rows = _round8(out_dim), _round8(out_dim), _round8(in_dim)

    def seg(w, b, rows):                     # pad each fused segment to 8-aligned sublane rows
        pad = rows - w.shape[0]
        return jnp.pad(w, ((0, pad), (0, 0))), jnp.pad(b, (0, pad))

    w_lin, b_lin = seg(params["w_lin"], params["b_lin"], lin_rows)
    w_conv, b_conv = seg(params["w_conv"][:, :, 1], params["b_conv"], conv_rows)  # middle tap
    w_g1, b_g1 = seg(params["w_g1"], params["b_g1"], gate_rows)

    w1 = jnp.concatenate([w_lin, w_conv, w_g1], axis=0).astype(jnp.float32)   # (F, in_dim)
    b1 = jnp.concatenate([b_lin, b_conv, b_g1]).astype(jnp.float32)[:, None]  # (F, 1)

    return {
        "in_dim": in_dim,
        "out_dim": out_dim,
        "conv_off": lin_rows,
        "gate_off": lin_rows + conv_rows,
        "seg_rows": (lin_rows, conv_rows, gate_rows),
        "w1": w1,
        "b1": b1,
        "w2": params["w_g2"].astype(jnp.float32),                 # (out_dim, in_dim)
        "b2": params["b_g2"].astype(jnp.float32)[:, None],        # (out_dim, 1)
    }


def _mix_row_scale(weights, packed):
    """(F, 1) row scale: mix0 on linear rows, mix1 on conv rows, 1.0 on gate rows."""
    lin_rows, conv_rows, gate_rows = packed["seg_rows"]
    w = weights.astype(jnp.float32)
    return jnp.concatenate([
        jnp.broadcast_to(w[0], (lin_rows,)),
        jnp.broadcast_to(w[1], (conv_rows,)),
        jnp.ones((gate_rows,), jnp.float32),
    ])[:, None]


def _choose_lane_tile(B, tb_max):
    """Lane tile for the batch axis: multiple of 128, <= tb_max, grid >= 2 when B > 128
    (so v7x's two TensorCores both get work), as fat as possible otherwise."""
    chunks_needed = pl.cdiv(B, 128)
    max_chunks = max(1, tb_max // 128)
    chunks = 1 if chunks_needed <= 1 else min(max_chunks, max(1, chunks_needed // 2))
    return chunks * 128


def trans_op_2_batched_t(xT, weights, packed, *, tb_max=1024):
    """Transposed-layout entry point. xT: (in_dim, B) f32, weights: (3,) -> (out_dim, B)."""
    in_dim, B = xT.shape
    out_dim = packed["out_dim"]
    assert in_dim == packed["in_dim"]

    tb = _choose_lane_tile(B, tb_max)
    steps = pl.cdiv(B, tb)
    Bp = steps * tb
    if Bp != B:                               # pad ragged batches; never one giant block
        xT = jnp.pad(xT, ((0, 0), (0, Bp - B)))

    mixv = _mix_row_scale(weights, packed)
    kernel = functools.partial(_trans_op2_kernel,
                               in_dim=in_dim, out_dim=out_dim,
                               conv_off=packed["conv_off"], gate_off=packed["gate_off"])
    smem = pl.BlockSpec(memory_space=pltpu.MemorySpace.SMEM)
    resident = lambda shape: pl.BlockSpec(shape, lambda i: (0, 0))   # VMEM-resident weights

    outT = pl.pallas_call(
        kernel,
        out_shape=jax.ShapeDtypeStruct((out_dim, Bp), jnp.float32),
        grid_spec=pltpu.PrefetchScalarGridSpec(
            num_scalar_prefetch=0,
            grid=(steps,),
            in_specs=[
                smem,                                                # (3,) mix weights
                pl.BlockSpec((in_dim, tb), lambda i: (0, i)),        # x^T lane tile
                resident(packed["w1"].shape),
                resident(packed["b1"].shape),
                resident(mixv.shape),
                resident(packed["w2"].shape),
                resident(packed["b2"].shape),
            ],
            out_specs=pl.BlockSpec((out_dim, tb), lambda i: (0, i)),
        ),
        compiler_params=pltpu.CompilerParams(
            dimension_semantics=("parallel",)),      # v7x: shard the batch over both TCs
    )(weights.astype(jnp.float32), xT.astype(jnp.float32),
      packed["w1"], packed["b1"], mixv, packed["w2"], packed["b2"])

    return outT[:, :B] if Bp != B else outT


def _trans_op2_xla(xT, weights, packed):
    """Plain-XLA path for tiny batches (B < 8): Pallas launch overhead dominates there."""
    hi = jax.lax.Precision.HIGHEST
    w = weights.astype(jnp.float32)
    x = xT.astype(jnp.float32)
    y1 = jax.nn.relu(jnp.matmul(packed["w1"], x, precision=hi) + packed["b1"])
    co, go = packed["conv_off"], packed["gate_off"]
    od, idim = packed["out_dim"], packed["in_dim"]
    g = y1[go:go + idim] * x
    y_gate = jax.nn.relu(jnp.matmul(packed["w2"], g, precision=hi) + packed["b2"])
    return w[0] * y1[:od] + w[1] * y1[co:co + od] + w[2] * y_gate


def trans_op_2_batched(x, weights, packed, *, tb_max=1024):
    """x: (B, in_dim) f32, weights: (3,) -> (B, out_dim) f32.  Transposes at the boundary;
    callers that can produce/consume (dim, batch) directly should use trans_op_2_batched_t."""
    B = x.shape[0]
    xT = jnp.transpose(x.astype(jnp.float32))
    if B < 8:
        outT = _trans_op2_xla(xT, weights, packed)
    else:
        outT = trans_op_2_batched_t(xT, weights, packed, tb_max=tb_max)
    return jnp.transpose(outT)


def trans_op_2(data, weights, packed):
    """Single-vector forward matching the PyTorch module: (in_dim,) -> (out_dim,)."""
    return trans_op_2_batched(data.reshape(1, -1), weights, packed)[0]


def trans_op_2_ref(data, weights, params):
    """Pure-JAX reference mirroring the PyTorch forward (full-precision matmuls)."""
    hi = jax.lax.Precision.HIGHEST
    y_lin = jax.nn.relu(jnp.matmul(params["w_lin"], data, precision=hi) + params["b_lin"])
    y_conv = jax.nn.relu(jnp.matmul(params["w_conv"][:, :, 1], data, precision=hi)
                         + params["b_conv"])
    h = jax.nn.relu(jnp.matmul(params["w_g1"], data, precision=hi) + params["b_g1"])
    g = h * data
    y_gate = jax.nn.relu(jnp.matmul(params["w_g2"], g, precision=hi) + params["b_g2"])
    return weights[0] * y_lin + weights[1] * y_conv + weights[2] * y_gate


if __name__ == "__main__":
    in_dim, out_dim = 32, 32

    key = jax.random.PRNGKey(0)
    ks = jax.random.split(key, 12)

    def init(k, shape, fan_in):
        bound = 1.0 / jnp.sqrt(jnp.float32(fan_in))
        return jax.random.uniform(k, shape, jnp.float32, -bound, bound)

    # Deterministic, torch-default-style (uniform +-1/sqrt(fan_in)) parameter init.
    params = {
        "w_lin":  init(ks[0], (out_dim, in_dim), in_dim),          # nn.Linear(in, out)
        "b_lin":  init(ks[1], (out_dim,), in_dim),
        "w_conv": init(ks[2], (out_dim, in_dim, 3), in_dim * 3),   # nn.Conv1d(in, out, 3)
        "b_conv": init(ks[3], (out_dim,), in_dim * 3),
        "w_g1":   init(ks[4], (in_dim, in_dim), in_dim),           # gate linear1
        "b_g1":   init(ks[5], (in_dim,), in_dim),
        "w_g2":   init(ks[6], (out_dim, in_dim), in_dim),          # gate linear2
        "b_g2":   init(ks[7], (out_dim,), in_dim),
    }
    mix = jax.nn.softmax(jax.random.normal(ks[8], (3,), jnp.float32))

    packed = prepack_params(params)       # one-time packing, not in the per-call path

    # 1) Single-vector call (exact PyTorch module semantics; tiny-B path uses plain XLA).
    data = jax.random.normal(ks[9], (in_dim,), jnp.float32)
    out1 = jax.block_until_ready(trans_op_2(data, mix, packed))
    ref1 = trans_op_2_ref(data, mix, params)
    assert out1.shape == (out_dim,)
    assert jnp.allclose(out1, ref1, atol=5e-5, rtol=5e-4), float(jnp.max(jnp.abs(out1 - ref1)))

    # 2) Batched Pallas call: B=256 -> two 128-lane tiles (grid=(2,), batch sharded on v7x).
    xb = jax.random.normal(ks[10], (256, in_dim), jnp.float32)
    outb = jax.block_until_ready(trans_op_2_batched(xb, mix, packed))
    refb = jax.vmap(lambda d: trans_op_2_ref(d, mix, params))(xb)
    assert outb.shape == (256, out_dim)
    assert jnp.allclose(outb, refb, atol=5e-5, rtol=5e-4), float(jnp.max(jnp.abs(outb - refb)))

    # 3) Ragged batch (B=300): exercises the zero-pad-to-grid path (no giant fallback block).
    xr = jax.random.normal(ks[11], (300, in_dim), jnp.float32)
    outr = jax.block_until_ready(trans_op_2_batched(xr, mix, packed))
    refr = jax.vmap(lambda d: trans_op_2_ref(d, mix, params))(xr)
    assert outr.shape == (300, out_dim)
    assert jnp.allclose(outr, refr, atol=5e-5, rtol=5e-4), float(jnp.max(jnp.abs(outr - refr)))

    print("KERNEL_OK")
</pallas_src>

<mosaic_0001>
module attributes {stable_mosaic.version = 11 : i64} {
  func.func @_trans_op2_kernel(%arg0: i32, %arg1: memref<3xf32, #tpu.memory_space<smem>>, %arg2: memref<32x128xf32, #tpu.memory_space<vmem>>, %arg3: memref<96x32xf32, #tpu.memory_space<vmem>>, %arg4: memref<96x1xf32, #tpu.memory_space<vmem>>, %arg5: memref<96x1xf32, #tpu.memory_space<vmem>>, %arg6: memref<32x32xf32, #tpu.memory_space<vmem>>, %arg7: memref<32x1xf32, #tpu.memory_space<vmem>>, %arg8: memref<32x128xf32, #tpu.memory_space<vmem>>) attributes {dimension_semantics = [#tpu.dimension_semantics<parallel>], iteration_bounds = array<i64: 2>, scalar_prefetch = 0 : i64, scratch_operands = 0 : i64, tpu.core_type = #tpu.core_type<tc>, window_params = [{transform_indices = @transform_0, window_bounds = array<i64: 3>}, {transform_indices = @transform_1, window_bounds = array<i64: 32, 128>}, {pipeline_mode = #tpu.pipeline_mode<synchronous>, transform_indices = @transform_2, window_bounds = array<i64: 96, 32>}, {pipeline_mode = #tpu.pipeline_mode<synchronous>, transform_indices = @transform_3, window_bounds = array<i64: 96, 1>}, {pipeline_mode = #tpu.pipeline_mode<synchronous>, transform_indices = @transform_4, window_bounds = array<i64: 96, 1>}, {pipeline_mode = #tpu.pipeline_mode<synchronous>, transform_indices = @transform_5, window_bounds = array<i64: 32, 32>}, {pipeline_mode = #tpu.pipeline_mode<synchronous>, transform_indices = @transform_6, window_bounds = array<i64: 32, 1>}, {transform_indices = @transform_7, window_bounds = array<i64: 32, 128>}]} {
    %c2 = arith.constant 2 : index
    %0 = memref.load %arg1[%c2] : memref<3xf32, #tpu.memory_space<smem>>
    %c0 = arith.constant 0 : index
    %c0_0 = arith.constant 0 : index
    %1 = vector.load %arg2[%c0, %c0_0] : memref<32x128xf32, #tpu.memory_space<vmem>>, vector<32x128xf32>
    %c0_1 = arith.constant 0 : index
    %c0_2 = arith.constant 0 : index
    %2 = vector.load %arg3[%c0_1, %c0_2] : memref<96x32xf32, #tpu.memory_space<vmem>>, vector<96x32xf32>
    %cst = arith.constant dense<0.000000e+00> : vector<96x128xf32>
    %3 = tpu.matmul %2, %1, %cst {dimension_numbers = #tpu.dot_dimension_numbers<[1], [0], [0], [1], [0, 0, 1, 1], [], []>} : vector<96x32xf32>, vector<32x128xf32>, vector<96x128xf32> -> vector<96x128xf32>
    %c0_3 = arith.constant 0 : index
    %c0_4 = arith.constant 0 : index
    %4 = vector.load %arg4[%c0_3, %c0_4] : memref<96x1xf32, #tpu.memory_space<vmem>>, vector<96x1xf32>
    %5 = vector.broadcast %4 : vector<96x1xf32> to vector<96x128xf32>
    %6 = arith.addf %3, %5 : vector<96x128xf32>
    %cst_5 = arith.constant 0.000000e+00 : f32
    %7 = vector.broadcast %cst_5 : f32 to vector<96x128xf32>
    %8 = arith.maximumf %6, %7 : vector<96x128xf32>
    %c0_6 = arith.constant 0 : index
    %c0_7 = arith.constant 0 : index
    %9 = vector.load %arg5[%c0_6, %c0_7] : memref<96x1xf32, #tpu.memory_space<vmem>>, vector<96x1xf32>
    %10 = vector.broadcast %9 : vector<96x1xf32> to vector<96x128xf32>
    %11 = arith.mulf %8, %10 : vector<96x128xf32>
    %12 = vector.extract_strided_slice %11 {offsets = [64, 0], sizes = [32, 128], strides = [1, 1]} : vector<96x128xf32> to vector<32x128xf32>
    %13 = arith.mulf %12, %1 : vector<32x128xf32>
    %c0_8 = arith.constant 0 : index
    %c0_9 = arith.constant 0 : index
    %14 = vector.load %arg6[%c0_8, %c0_9] : memref<32x32xf32, #tpu.memory_space<vmem>>, vector<32x32xf32>
    %cst_10 = arith.constant dense<0.000000e+00> : vector<32x128xf32>
    %15 = tpu.matmul %14, %13, %cst_10 {dimension_numbers = #tpu.dot_dimension_numbers<[1], [0], [0], [1], [0, 0, 1, 1], [], []>} : vector<32x32xf32>, vector<32x128xf32>, vector<32x128xf32> -> vector<32x128xf32>
    %c0_11 = arith.constant 0 : index
    %c0_12 = arith.constant 0 : index
    %16 = vector.load %arg7[%c0_11, %c0_12] : memref<32x1xf32, #tpu.memory_space<vmem>>, vector<32x1xf32>
    %17 = vector.broadcast %16 : vector<32x1xf32> to vector<32x128xf32>
    %18 = arith.addf %15, %17 : vector<32x128xf32>
    %cst_13 = arith.constant 0.000000e+00 : f32
    %19 = vector.broadcast %cst_13 : f32 to vector<32x128xf32>
    %20 = arith.maximumf %18, %19 : vector<32x128xf32>
    %21 = vector.extract_strided_slice %11 {offsets = [0, 0], sizes = [32, 128], strides = [1, 1]} : vector<96x128xf32> to vector<32x128xf32>
    %22 = vector.extract_strided_slice %11 {offsets = [32, 0], sizes = [32, 128], strides = [1, 1]} : vector<96x128xf32> to vector<32x128xf32>
    %23 = arith.addf %21, %22 : vector<32x128xf32>
    %24 = vector.broadcast %0 : f32 to vector<32x128xf32>
    %25 = arith.mulf %24, %20 : vector<32x128xf32>
    %26 = arith.addf %23, %25 : vector<32x128xf32>
    %c0_14 = arith.constant 0 : index
    %c0_15 = arith.constant 0 : index
    %27 = vector.load %arg8[%c0_14, %c0_15] : memref<32x128xf32, #tpu.memory_space<vmem>>, vector<32x128xf32>
    tpu.vector_store %arg8[%c0_14, %c0_15], %26 {strides = array<i32>} : memref<32x128xf32, #tpu.memory_space<vmem>>, vector<32x128xf32>,
    return
  }
  func.func @transform_0(%arg0: i32) -> i32 {
    %c0_i32 = arith.constant 0 : i32
    %c0_i32_0 = arith.constant 0 : i32
    return %c0_i32 : i32
  }
  func.func @transform_1(%arg0: i32) -> (i32, i32) {
    %c0_i32 = arith.constant 0 : i32
    %c0_i32_0 = arith.constant 0 : i32
    return %c0_i32, %arg0 : i32, i32
  }
  func.func @transform_2(%arg0: i32) -> (i32, i32) {
    %c0_i32 = arith.constant 0 : i32
    %c0_i32_0 = arith.constant 0 : i32
    %c0_i32_1 = arith.constant 0 : i32
    return %c0_i32, %c0_i32_0 : i32, i32
  }
  func.func @transform_3(%arg0: i32) -> (i32, i32) {
    %c0_i32 = arith.constant 0 : i32
    %c0_i32_0 = arith.constant 0 : i32
    %c0_i32_1 = arith.constant 0 : i32
    return %c0_i32, %c0_i32_0 : i32, i32
  }
  func.func @transform_4(%arg0: i32) -> (i32, i32) {
    %c0_i32 = arith.constant 0 : i32
    %c0_i32_0 = arith.constant 0 : i32
    %c0_i32_1 = arith.constant 0 : i32
    return %c0_i32, %c0_i32_0 : i32, i32
  }
  func.func @transform_5(%arg0: i32) -> (i32, i32) {
    %c0_i32 = arith.constant 0 : i32
    %c0_i32_0 = arith.constant 0 : i32
    %c0_i32_1 = arith.constant 0 : i32
    return %c0_i32, %c0_i32_0 : i32, i32
  }
  func.func @transform_6(%arg0: i32) -> (i32, i32) {
    %c0_i32 = arith.constant 0 : i32
    %c0_i32_0 = arith.constant 0 : i32
    %c0_i32_1 = arith.constant 0 : i32
    return %c0_i32, %c0_i32_0 : i32, i32
  }
  func.func @transform_7(%arg0: i32) -> (i32, i32) {
    %c0_i32 = arith.constant 0 : i32
    %c0_i32_0 = arith.constant 0 : i32
    return %c0_i32, %arg0 : i32, i32
  }
}

</mosaic_0001>

<bundles_post_ra>
// kernel: tpu_custom_call.1
= control target key start
LH: loop header
LB: loop body
LE: loop exit
PB: predicated region body
PF: predicated region fallthrough
CT: control target
= control target key end

     0   :  { %12 = vsyncpa [#allocation4], 0  ;;  %s1529_s0 = inlined_call_operand.vmem [shape: f32[3], index: 0, kind: input, shape index: {}]   ;;  %s1530_s1 = inlined_call_operand.vmem [shape: f32[32,256], index: 1, kind: input, shape index: {}]   ;;  %s1531_s2 = inlined_call_operand.vmem [shape: f32[96,32], index: 2, kind: input, shape index: {}]   ;;  %s1532_s3 = inlined_call_operand.vmem [shape: f32[96,1], index: 3, kind: input, shape index: {}]   ;;  %s1533_s4 = inlined_call_operand.vmem [shape: f32[96,1], index: 4, kind: input, shape index: {}]   ;;  %s1534_s5 = inlined_call_operand.vmem [shape: f32[32,32], index: 5, kind: input, shape index: {}]   ;;  %s1535_s6 = inlined_call_operand.vmem [shape: f32[32,1], index: 6, kind: input, shape index: {}]   ;;  %s1536_s7 = inlined_call_operand.hbm [shape: f32[32,256], index: 7, kind: output, shape index: {}]  }
   0x1   :  { %13 = vsyncpa [#allocation3], 0 }
   0x2   :  { %15 = vsyncpa [#allocation3 + $0x1], 0  ;;  %s1214_s24 = smov 0   ;;  %s1216_s25 = smov 0  }
   0x3   :  { %s1218_s26 = smov 0   ;;  %s1220_s27 = smov 0  }
   0x4 LB: > { %s1235_s28 = sadd.s32 4294967295, %s1166_s27   ;;  %s928_s29 = sadd.s32 4294967294, %s1166_s27   ;;  %s1166_s27 = sphi %s1220_s27, %s1547_s27   ;;  %s1162_s26 = sphi %s1218_s26, %s1546_s26   ;;  %s1158_s25 = sphi %s1216_s25, %s1545_s25   ;;  %s1154_s24 = sphi %s1214_s24, %s1544_s24  }
   0x5   : > { %s1239_s30 = sadd.s32 1, %s1166_s27   ;;  %s49_s8 = sadd.s32 1, %s1162_s26 }
   0x6   : > { %s46_s9 = ssub.s32 %s1166_s27, %s1239_s30  ;;  %p56_p0 = scmp.ne.s32.totalorder %s1162_s26, %s1158_s25 }
   0x7   : > { %p47_p1 = scmp.eq.s32.totalorder %s46_s9, 0  ;;  %p57_p2 = scmp.eq.s32.totalorder %s1166_s27, 0 }
   0x8   : > { %p191_p3 = scmp.eq.s32.totalorder %s1235_s28, 1  ;;  %p196_p4 = scmp.ne.s32.totalorder %s1158_s25, %s1154_s24 }
   0x9   : > { %s1251_s10 = scalar_select %p47_p1, %s1162_s26, %s49_s8  }
   0xa   : > { %p1253_p5 = por %p57_p2, %p56_p0  ;;  %p1257_p6 = por %p191_p3, %p56_p0 }
   0xb   : > { %p197_p7 = scmp.eq.s32.totalorder %s928_s29, 1  ;;  %p929_p8 = scmp.ge.s32.totalorder %s1166_s27, 1 }
   0xc   : > { %s1539_s12 = scalar_select %p1257_p6, 1, 0 }
   0xd   : > { %p204_p9 = scmp.lt.s32.totalorder %s1166_s27, 3  ;;  %p1263_p10 = por %p197_p7, %p196_p4 }
   0xe   : > { %p1045_p11 = scmp.eq.s32.totalorder %s1235_s28, 0  ;;  %s217_s17 = sshll.u32 %s1529_s0, 4  ;;  %s218_s17 = int_to_ptr.vmem [resolvable:$true] %s217_s17 }
   0xf   : > { %s1540_s13 = scalar_select %p1263_p10, 1, 0 }
  0x10   : > { %p1268_p12 = pnand %p929_p8, %p204_p9  ;;  %s1087_s18 = scalar_lea.vmem %s218_s17, 16 }
  0x11   : > { %p1088_p1 = scmp.ne.s32.totalorder %s218_s17, %s1087_s18  ;;  %p1095_p7 = scmp.lt.s32.totalorder %s218_s17, %s218_s17 }
  0x12   : > { %p1037_p13 = pneg %p1268_p12  ;;  %p1096_p8 = scmp.lt.s32.totalorder %s1087_s18, %s1087_s18 }
  0x14   : > { %p1038_p0 = pnand %p1045_p11, %p1037_p13  ;;  %p1097_p9 = por %p1096_p8, %p1095_p7 }
  0x16   : > { %p1089_p2 = pneg %p1038_p0 }
  0x18   : > { %p1090_p3 = pnand %p1089_p2, %p1088_p1 }
  0x1a   : > { %p1091_p4 = pneg %p1090_p3 }
  0x1c   : > { %p1098_p10 = pnand %p1097_p9, %p1091_p4 }
  0x1e   : > { %1101 = shalt.err (!%p1098_p10)
}
  0x1f   : > { %s1168_s19 = smov [#allocation2]   ;;  %p931_p6 = scmp.ge.s32.totalorder %s1166_s27, 2 }
  0x20   : > { %1040 = dma.vmem_to_smem (!%p1038_p0), %s218_s17, 16, %s1168_s19, [#allocation4]  }
  0x21   : > { %239 = sbr.rel (%p931_p6) target bundleno = 44 (0x2c), region = 40 }
  0x26   : > { %242 = sbr.rel (!%p1253_p5) target bundleno = 44 (0x2c), region = 44  ;;  %s244_s20 = sand.u32 (%p1253_p5), 1, %s1162_s26  }
  0x27   : > { %s933_s21 = sshll.u32 (%p1253_p5), %s1166_s27, 3  ;;  %s932_s22 = sshll.u32 (%p1253_p5), %s244_s20, 5 }
  0x28   : > { %s248_s8 = scalar_lea.vmem (%p1253_p5), %s1530_s1, %s933_s21  ;;  %s246_s9 = scalar_lea.vmem (%p1253_p5), [#allocation5], %s932_s22 }
  0x29   : > { %v283_v0 = vld [vmem:[%s248_s8] sm:$0xff] (%p1253_p5)  ;;  %v285_v1 = vld [vmem:[%s248_s8 + $0x10] sm:$0xff] (%p1253_p5) }
  0x2a   : > { %v287_v2 = vld [vmem:[%s248_s8 + $0x20] sm:$0xff] (%p1253_p5)  ;;  %284 = vst [vmem:[%s246_s9] sm:$0xff] (%p1253_p5), %v283_v0  ;;  %286 = vst [vmem:[%s246_s9 + $0x8] sm:$0xff] (%p1253_p5), %v285_v1  ;;  %v289_v3 = vld [vmem:[%s248_s8 + $0x30] sm:$0xff] (%p1253_p5) }
  0x2b   : > { %288 = vst [vmem:[%s246_s9 + $0x10] sm:$0xff] %v287_v2  ;;  %290 = vst [vmem:[%s246_s9 + $0x18] sm:$0xff] %v289_v3 }
  0x2c PF: > { %299 = sbr.rel (%p1268_p12) target bundleno = 499 (0x1f3), region = 82 }
  0x31   : > { %1145 = dma.done.wait (%p1045_p11), [#allocation4], 16  }
  0x32   : > { %1147 = vsyncadd (%p1045_p11), [#allocation4], 4294967280  ;;  %s306_s11 = sand.u32 1, %s1158_s25  }
  0x33   : > { %s1298_s15 = sshll.u32 %s306_s11, 5 }
  0x34   : > { %s308_s16 = scalar_lea.vmem [#allocation5], %s1298_s15 }
  0x35   : > { %312 = sfence }
  0x36   : > { %v1301_v4 = vld [vmem:[%s308_s16 + $0x18] sm:$0xff]  ;;  %v1303_v5 = vld [vmem:[%s308_s16 + $0x10] sm:$0xff]  ;;  %v1309_v6 = vld [vmem:[%s308_s16 + $0x8] sm:$0xff]  ;;  %vm427_vm0 = vcmask 261120   ;;  %v1169_v19 = vmov 0   ;;  %s938_s20 = sld [smem:[#allocation2 + $0x2]] }
  0x37   : > { %983 = vmatprep.subr.mxu0 %v1301_v4  ;;  %1023 = vmatprep.subr.mxu1 %v1301_v4  ;;  %v1315_v7 = vld [vmem:[%s308_s16] sm:$0xff]  ;;  %v344_v10 = vld [vmem:[%s1531_s2 + $0x8] sm:$0xff]  ;;  %v345_v12 = vld [vmem:[%s1531_s2 + $0x10] sm:$0xff]  ;;  %s337_s21 = scalar_lea.vmem [#allocation6], %s1298_s15  ;;  %s956_s23 = sshll.u32 %s1235_s28, 7 }
  0x38   : > { %984 = vmatpush3.msra.mxu0 %v1301_v4  ;;  %1027 = vmatpush3.msra.mxu1 %v1301_v4  ;;  %v343_v8 = vld [vmem:[%s1531_s2] sm:$0xff]  ;;  %v352_v11 = vld [vmem:[%s1531_s2 + $0x48] sm:$0xff]  ;;  %v353_v13 = vld [vmem:[%s1531_s2 + $0x50] sm:$0xff]  ;;  %s848_s22 = sshll.u32 %s337_s21, 4  ;;  %s1484_s8 = scalar_lea.hbm %s1536_s7, %s956_s23  ;;  %s1479_s22 = int_to_ptr.vmem [resolvable:$true] %s848_s22 }
  0x39   : > { %985 = vmatprep.subr.mxu0 %v1303_v5  ;;  %1024 = vmatprep.subr.mxu1 %v1303_v5  ;;  %v351_v9 = vld [vmem:[%s1531_s2 + $0x40] sm:$0xff]  ;;  %v366_v14 = vld [vmem:[%s1532_s3 + $0x58] sm:$0xff]  ;;  %v364_v15 = vld [vmem:[%s1532_s3 + $0x48] sm:$0xff]  ;;  %s1488_s9 = scalar_lea.sflag [#allocation3], %s306_s11  ;;  %s1102_s28 = scalar_lea.vmem %s1479_s22, 512 }
  0x3a   : > { %986 = vmatpush3.msra.mxu0 %v1303_v5  ;;  %1028 = vmatpush3.msra.mxu1 %v1303_v5  ;;  %v346_v16 = vld [vmem:[%s1531_s2 + $0x18] sm:$0xff]  ;;  %v347_v18 = vld [vmem:[%s1531_s2 + $0x20] sm:$0xff]  ;;  %v365_v20 = vld [vmem:[%s1532_s3 + $0x50] sm:$0xff]  ;;  %p1103_p5 = scmp.ne.s32.totalorder %s1479_s22, %s1102_s28  ;;  %p1542_p10 = scmp.ne.s32.totalorder %s1539_s12, 0 }
  0x3b   : > { %987 = vmatprep.subr.mxu0 %v1309_v6  ;;  %1025 = vmatprep.subr.mxu1 %v1309_v6  ;;  %v354_v17 = vld [vmem:[%s1531_s2 + $0x58] sm:$0xff]  ;;  %v348_v22 = vld [vmem:[%s1531_s2 + $0x28] sm:$0xff]  ;;  %v349_v23 = vld [vmem:[%s1531_s2 + $0x30] sm:$0xff]  ;;  %s1170_s16 = smov [#allocation6]  }
  0x3c   : > { %988 = vmatpush3.msra.mxu0 %v1309_v6  ;;  %1029 = vmatpush3.msra.mxu1 %v1309_v6  ;;  %v612_v21 = vld [vmem:[%s1533_s4 + $0x58] sm:$0xff]  ;;  %v363_v24 = vld [vmem:[%s1532_s3 + $0x40] sm:$0xff]  ;;  %v611_v25 = vld [vmem:[%s1533_s4 + $0x50] sm:$0xff]  ;;  %p1104_p11 = pnand %p1103_p5, %p1542_p10  ;;  %s1106_s14 = sshll.u32 %s1170_s16, 4  ;;  %s1107_s14 = int_to_ptr.vmem [resolvable:$false] %s1106_s14 }
  0x3d   : > { %989 = vmatprep.subr.mxu0 %v1315_v7  ;;  %1026 = vmatprep.subr.mxu1 %v1315_v7  ;;  %v350_v26 = vld [vmem:[%s1531_s2 + $0x38] sm:$0xff]  ;;  %v610_v27 = vld [vmem:[%s1533_s4 + $0x48] sm:$0xff]  ;;  %v609_v28 = vld [vmem:[%s1533_s4 + $0x40] sm:$0xff]  ;;  %s1108_s17 = scalar_lea.vmem %s1107_s14, 1024  ;;  %p1109_p13 = scmp.lt.s32.totalorder %s1479_s22, %s1107_s14 }
  0x3e   : > { %990 = vmatpush3.msra.mxu0 %v1315_v7  ;;  %1030 = vmatpush3.msra.mxu1 %v1315_v7  ;;  %v355_v29 = vld [vmem:[%s1532_s3] sm:$0xff]  ;;  %v356_v30 = vld [vmem:[%s1532_s3 + $0x8] sm:$0xff]  ;;  %v357_v31 = vld [vmem:[%s1532_s3 + $0x10] sm:$0xff]  ;;  %p1105_p12 = pneg %p1104_p11  ;;  %p1110_p0 = scmp.lt.s32.totalorder %s1108_s17, %s1102_s28 }
  0x3f   : > { %991 = vmatprep.mubr.msk.f32.mxu0 %vm427_vm0, %v343_v8  ;;  %1003 = vmatprep.mubr.msk.f32.mxu1 %vm427_vm0, %v351_v9  ;;  %v358_v32 = vld [vmem:[%s1532_s3 + $0x18] sm:$0xff]  ;;  %v359_v33 = vld [vmem:[%s1532_s3 + $0x20] sm:$0xff]  ;;  %v360_v34 = vld [vmem:[%s1532_s3 + $0x28] sm:$0xff] }
  0x40   : > { %992 = vmatmul.mubr.msk.f32.vlgmr.msra.gmra.mxu0 %vm427_vm0, %v344_v10  ;;  %1004 = vmatmul.mubr.msk.f32.vlgmr.msra.gmra.mxu1 %vm427_vm0, %v352_v11  ;;  %v361_v35 = vld [vmem:[%s1532_s3 + $0x30] sm:$0xff]  ;;  %v362_v36 = vld [vmem:[%s1532_s3 + $0x38] sm:$0xff]  ;;  %v693_v37 = vld [vmem:[%s1535_s6] sm:$0xff]  ;;  %p1111_p1 = por %p1110_p0, %p1109_p13 }
  0x41   : > { %994 = vmatprep.mubr.msk.f32.mxu0 %vm427_vm0, %v345_v12  ;;  %1006 = vmatprep.mubr.msk.f32.mxu1 %vm427_vm0, %v353_v13  ;;  %v694_v38 = vld [vmem:[%s1535_s6 + $0x8] sm:$0xff]  ;;  %v695_v39 = vld [vmem:[%s1535_s6 + $0x10] sm:$0xff]  ;;  %v696_v40 = vld [vmem:[%s1535_s6 + $0x18] sm:$0xff] }
  0x42   : > { %1085 = vset.pattern.permute.xlu0 %v1169_v19  ;;  %1086 = vset.pattern.permute.xlu1 %v1169_v19  ;;  %v601_v41 = vld [vmem:[%s1533_s4] sm:$0xff]  ;;  %v602_v42 = vld [vmem:[%s1533_s4 + $0x8] sm:$0xff]  ;;  %v603_v43 = vld [vmem:[%s1533_s4 + $0x10] sm:$0xff]  ;;  %p1112_p2 = pnand %p1111_p1, %p1105_p12 }
  0x43   : > { %424 = vperm.xlu0 %1085, %v366_v14   ;;  %414 = vperm.xlu1 %1086, %v364_v15   ;;  %v604_v44 = vld [vmem:[%s1533_s4 + $0x18] sm:$0xff]  ;;  %v605_v45 = vld [vmem:[%s1533_s4 + $0x20] sm:$0xff]  ;;  %v606_v46 = vld [vmem:[%s1533_s4 + $0x28] sm:$0xff] }
  0x44   : > { %995 = vmatmul.mubr.msk.f32.gmra.mxu0 %vm427_vm0, %v346_v16  ;;  %1007 = vmatmul.mubr.msk.f32.gmra.mxu1 %vm427_vm0, %v354_v17  ;;  %v607_v47 = vld [vmem:[%s1533_s4 + $0x30] sm:$0xff]  ;;  %v608_v48 = vld [vmem:[%s1533_s4 + $0x38] sm:$0xff]  ;;  %v689_v49 = vld [vmem:[%s1534_s5] sm:$0xff] }
  0x45   : > { %997 = vmatprep.mubr.msk.f32.mxu0 %vm427_vm0, %v347_v18  ;;  %1017 = vmatprep.mubr.msk.f32.mxu1 %vm427_vm0, %v689_v49  ;;  %v690_v18 = vld [vmem:[%s1534_s5 + $0x8] sm:$0xff] }
  0x47   : > { %419 = vperm.xlu0 %1085, %v365_v20   ;;  %670 = vperm.xlu1 %1086, %v612_v21  }
  0x48   : > { %998 = vmatmul.mubr.msk.f32.gmra.mxu0 %vm427_vm0, %v348_v22 }
  0x49   : > { %1000 = vmatprep.mubr.msk.f32.mxu0 %vm427_vm0, %v349_v23 }
  0x4b   : > { %409 = vperm.xlu0 %1085, %v363_v24   ;;  %665 = vperm.xlu1 %1086, %v611_v25  }
  0x4c   : > { %1001 = vmatmul.mubr.msk.f32.gmra.mxu0 %vm427_vm0, %v350_v26 }
  0x4f   : > { %660 = vperm.xlu0 %1085, %v610_v27   ;;  %655 = vperm.xlu1 %1086, %v609_v28  }
  0x53   : > { %369 = vperm.xlu0 %1085, %v355_v29   ;;  %374 = vperm.xlu1 %1086, %v356_v30  }
  0x57   : > { %379 = vperm.xlu0 %1085, %v357_v31   ;;  %384 = vperm.xlu1 %1086, %v358_v32  }
  0x5b   : > { %389 = vperm.xlu0 %1085, %v359_v33   ;;  %394 = vperm.xlu1 %1086, %v360_v34  }
  0x5f   : > { %399 = vperm.xlu0 %1085, %v361_v35   ;;  %404 = vperm.xlu1 %1086, %v362_v36  }
  0x63   : > { %699 = vperm.xlu0 %1085, %v693_v37   ;;  %704 = vperm.xlu1 %1086, %v694_v38  }
  0x67   : > { %709 = vperm.xlu0 %1085, %v695_v39   ;;  %714 = vperm.xlu1 %1086, %v696_v40  }
  0x6b   : > { %615 = vperm.xlu0 %1085, %v601_v41   ;;  %620 = vperm.xlu1 %1086, %v602_v42  }
  0x6f   : > { %625 = vperm.xlu0 %1085, %v603_v43   ;;  %630 = vperm.xlu1 %1086, %v604_v44  }
  0x73   : > { %635 = vperm.xlu0 %1085, %v605_v45   ;;  %640 = vperm.xlu1 %1086, %v606_v46  }
  0x77   : > { %645 = vperm.xlu0 %1085, %v607_v47   ;;  %650 = vperm.xlu1 %1086, %v608_v48  }
  0xbe   : > { %v425_v50 = vpop.permute.xlu0 %424  ;;  %v415_v51 = vpop.permute.xlu1 %414 }
  0xc2   : > { %v420_v52 = vpop.permute.xlu0 %419  ;;  %v671_v54 = vpop.permute.xlu1 %670 }
  0xc6   : > { %v410_v58 = vpop.permute.xlu0 %409  ;;  %v666_v62 = vpop.permute.xlu1 %665 }
  0xca   : > { %v661_v9 = vpop.permute.xlu0 %660  ;;  %v656_v13 = vpop.permute.xlu1 %655 }
 0x100   : > { %v1005_v53 = vpop.f32.mrf.mxu1  ;;  %v993_v23 = vpop.f32.mrf.mxu0 }
 0x101   : > { %v576_v56 = vadd.f32 %v1005_v53, %v415_v51 }
 0x102   : > { %v570_v55 = vpop.f32.mrf.mxu1  ;;  %v530_v26 = vpop.f32.mrf.mxu0 }
 0x103   : > { %v571_v59 = vadd.f32 %v570_v55, %v410_v58  ;;  %v598_v0 = vmax.f32 %v576_v56, 0.0 }
 0x104   : > { %v1008_v57 = vpop.f32.mrf.mxu1  ;;  %v996_v29 = vpop.f32.mrf.mxu0 }
 0x105   : > { %v586_v60 = vadd.f32 %v1008_v57, %v425_v50  ;;  %v597_v3 = vmax.f32 %v571_v59, 0.0  ;;  %v682_v11 = vmul.f32 %v661_v9, %v598_v0 }
 0x106   : > { %v580_v61 = vpop.f32.mrf.mxu1  ;;  %v540_v30 = vpop.f32.mrf.mxu0 }
 0x107   : > { %v581_v63 = vadd.f32 %v580_v61, %v420_v52  ;;  %v600_v1 = vmax.f32 %v586_v60, 0.0  ;;  %v681_v15 = vmul.f32 %v656_v13, %v597_v3  ;;  %v686_v16 = vmul.f32 %v682_v11, %v1309_v6  ;;  %v375_v6 = vpop.permute.xlu1 %374 }
 0x108   : > { %v999_v33 = vpop.f32.mrf.mxu0  ;;  %v536_v41 = vadd.f32 %v993_v23, %v375_v6 }
 0x109   : > { %v599_v2 = vmax.f32 %v581_v63, 0.0  ;;  %v684_v8 = vmul.f32 %v671_v54, %v600_v1  ;;  %v685_v17 = vmul.f32 %v681_v15, %v1315_v7  ;;  %v370_v7 = vpop.permute.xlu0 %369  ;;  %v822_v63 = vstv %s938_s20 }
 0x10a   : > { %v550_v36 = vpop.f32.mrf.mxu0  ;;  %v531_v44 = vadd.f32 %v530_v26, %v370_v7  ;;  %v590_v46 = vmax.f32 %v536_v41, 0.0 }
 0x10b   : > { %v683_v10 = vmul.f32 %v666_v62, %v599_v2  ;;  %v688_v12 = vmul.f32 %v684_v8, %v1301_v4  ;;  %v691_v4 = vld [vmem:[%s1534_s5 + $0x10] sm:$0xff]  ;;  %v385_v19 = vpop.permute.xlu1 %384 }
 0x10c   : > { %v1002_v37 = vpop.f32.mrf.mxu0  ;;  %v546_v49 = vadd.f32 %v996_v29, %v385_v19  ;;  %v589_v53 = vmax.f32 %v531_v44, 0.0 }
 0x10d   : > { %v687_v14 = vmul.f32 %v683_v10, %v1303_v5  ;;  %1009 = vmatprep.subr.mxu1 %v688_v12  ;;  %v692_v5 = vld [vmem:[%s1534_s5 + $0x18] sm:$0xff]  ;;  %v380_v20 = vpop.permute.xlu0 %379 }
 0x10e   : > { %1010 = vmatpush3.msra.mxu1 %v688_v12  ;;  %v560_v43 = vpop.f32.mrf.mxu0  ;;  %v541_v54 = vadd.f32 %v540_v30, %v380_v20  ;;  %v592_v60 = vmax.f32 %v546_v49, 0.0 }
 0x10f   : > { %1011 = vmatprep.subr.mxu1 %v687_v14  ;;  %v395_v21 = vpop.permute.xlu1 %394 }
 0x110   : > { %1012 = vmatpush3.msra.mxu1 %v687_v14  ;;  %v556_v39 = vadd.f32 %v999_v33, %v395_v21  ;;  %v591_v9 = vmax.f32 %v541_v54, 0.0 }
 0x111   : > { %1013 = vmatprep.subr.mxu1 %v686_v16  ;;  %v390_v22 = vpop.permute.xlu0 %389 }
 0x112   : > { %1014 = vmatpush3.msra.mxu1 %v686_v16  ;;  %v551_v42 = vadd.f32 %v550_v36, %v390_v22  ;;  %v594_v45 = vmax.f32 %v556_v39, 0.0 }
 0x113   : > { %1015 = vmatprep.subr.mxu1 %v685_v17  ;;  %v405_v24 = vpop.permute.xlu1 %404 }
 0x114   : > { %1016 = vmatpush3.msra.mxu1 %v685_v17  ;;  %v566_v47 = vadd.f32 %v1002_v37, %v405_v24  ;;  %v593_v50 = vmax.f32 %v551_v42, 0.0 }
 0x115   : > { %1018 = vmatmul.mubr.msk.f32.vlgmr.msra.gmra.mxu1 %vm427_vm0, %v690_v18  ;;  %v400_v25 = vpop.permute.xlu0 %399 }
 0x116   : > { %1020 = vmatprep.mubr.msk.f32.mxu1 %vm427_vm0, %v691_v4  ;;  %v561_v51 = vadd.f32 %v560_v43, %v400_v25  ;;  %v596_v58 = vmax.f32 %v566_v47, 0.0 }
 0x117   : > { %v705_v27 = vpop.permute.xlu1 %704 }
 0x118   : > { %v595_v62 = vmax.f32 %v561_v51, 0.0 }
 0x119   : > { %1021 = vmatmul.mubr.msk.f32.gmra.mxu1 %vm427_vm0, %v692_v5  ;;  %v700_v28 = vpop.permute.xlu0 %699 }
 0x11b   : > { %v715_v31 = vpop.permute.xlu1 %714 }
 0x11d   : > { %v710_v32 = vpop.permute.xlu0 %709 }
 0x11f   : > { %v621_v34 = vpop.permute.xlu1 %620 }
 0x120   : > { %v674_v57 = vmul.f32 %v621_v34, %v590_v46 }
 0x121   : > { %v616_v35 = vpop.permute.xlu0 %615 }
 0x122   : > { %v673_v8 = vmul.f32 %v616_v35, %v589_v53 }
 0x123   : > { %v631_v38 = vpop.permute.xlu1 %630 }
 0x124   : > { %v676_v17 = vmul.f32 %v631_v38, %v592_v60 }
 0x125   : > { %v626_v40 = vpop.permute.xlu0 %625 }
 0x126   : > { %v675_v21 = vmul.f32 %v626_v40, %v591_v9 }
 0x127   : > { %v641_v48 = vpop.permute.xlu1 %640 }
 0x128   : > { %v678_v55 = vmul.f32 %v641_v48, %v594_v45 }
 0x129   : > { %v636_v52 = vpop.permute.xlu0 %635 }
 0x12a   : > { %v677_v61 = vmul.f32 %v636_v52, %v593_v50  ;;  %v819_v10 = vadd.f32 %v678_v55, %v674_v57 }
 0x12b   : > { %v651_v3 = vpop.permute.xlu1 %650 }
 0x12c   : > { %v680_v13 = vmul.f32 %v651_v3, %v596_v58  ;;  %v818_v18 = vadd.f32 %v677_v61, %v673_v8 }
 0x12d   : > { %v646_v12 = vpop.permute.xlu0 %645 }
 0x12e   : > { %v679_v4 = vmul.f32 %v646_v12, %v595_v62  ;;  %v821_v22 = vadd.f32 %v680_v13, %v676_v17 }
 0x130   : > { %v820_v26 = vadd.f32 %v679_v4, %v675_v21 }
 0x1d5   : > { %v1019_v56 = vpop.f32.mrf.mxu1 }
 0x1d6   : > { %v801_v59 = vadd.f32 %v1019_v56, %v705_v27 }
 0x1d7   : > { %v795_v0 = vpop.f32.mrf.mxu1 }
 0x1d8   : > { %v815_v1 = vmax.f32 %v801_v59, 0.0  ;;  %v796_v2 = vadd.f32 %v795_v0, %v700_v28 }
 0x1d9   : > { %v1022_v11 = vpop.f32.mrf.mxu1 }
 0x1da   : > { %v824_v14 = vmul.f32 %v822_v63, %v815_v1  ;;  %v814_v15 = vmax.f32 %v796_v2, 0.0  ;;  %v811_v16 = vadd.f32 %v1022_v11, %v715_v31 }
 0x1db   : > { %v805_v5 = vpop.f32.mrf.mxu1 }
 0x1dc   : > { %v828_v6 = vadd.f32 %v824_v14, %v819_v10  ;;  %v823_v7 = vmul.f32 %v822_v63, %v814_v15  ;;  %v817_v19 = vmax.f32 %v811_v16, 0.0  ;;  %v806_v20 = vadd.f32 %v805_v5, %v710_v32 }
 0x1de   : > { %832 = vst [vmem:[%s337_s21 + $0x8] sm:$0xff] %v828_v6  ;;  %v827_v23 = vadd.f32 %v823_v7, %v818_v18  ;;  %v826_v24 = vmul.f32 %v822_v63, %v817_v19  ;;  %v816_v25 = vmax.f32 %v806_v20, 0.0 }
 0x1e0   : > { %831 = vst [vmem:[%s337_s21] sm:$0xff] %v827_v23  ;;  %v830_v27 = vadd.f32 %v826_v24, %v821_v22  ;;  %v825_v28 = vmul.f32 %v822_v63, %v816_v25 }
 0x1e2   : > { %834 = vst [vmem:[%s337_s21 + $0x18] sm:$0xff] %v830_v27  ;;  %v829_v29 = vadd.f32 %v825_v28, %v820_v26 }
 0x1e4   : > { %833 = vst [vmem:[%s337_s21 + $0x10] sm:$0xff] %v829_v29 }
 0x1e5   : > { %1115 = shalt.err (!%p1112_p2)
}
 0x1e6   : > { %s1116_s11 = scalar_lea.hbm %s1484_s8, 512  ;;  %s1120_s20 = scalar_lea.hbm %s1536_s7, 1024 }
 0x1e7   : > { %p1117_p3 = scmp.ne.s32.totalorder %s1484_s8, %s1116_s11  ;;  %p1121_p8 = scmp.lt.s32.totalorder %s1484_s8, %s1536_s7 }
 0x1e8   : > { %p1122_p9 = scmp.lt.s32.totalorder %s1120_s20, %s1116_s11 }
 0x1e9   : > { %p1118_p4 = pnand %p1117_p3, %p1542_p10 }
 0x1ea   : > { %p1123_p5 = por %p1122_p9, %p1121_p8 }
 0x1eb   : > { %p1119_p7 = pneg %p1118_p4 }
 0x1ed   : > { %p1124_p11 = pnand %p1123_p5, %p1119_p7 }
 0x1ef   : > { %1127 = shalt.err (!%p1124_p11)
}
 0x1f0   : > { %s1171_s29 = smov 128   ;;  %s1172_s15 = smov 256  }
 0x1f1   : > { %s1173_s28 = smov 8  }
 0x1f2   : > { %1035 = dma.vmem_to_hbm [thread:$0]  (%p1542_p10), %s1479_s22, 512, %s1484_s8, %s1488_s9, %s1171_s29, %s1172_s15, %s1173_s28  }
 0x1f3 PF: > { %s863_s16 = sand.u32 1, %s1154_s24   ;;  %p1543_p12 = scmp.ne.s32.totalorder %s1540_s13, 0 }
 0x1f4   : > { %s864_s14 = scalar_lea.sflag [#allocation3], %s863_s16 }
 0x1f5   : > { %p1042_p13 = pnand %p931_p6, %p1543_p12 }
 0x1f7   : > { %p1043_p0 = pneg %p1042_p13 }
 0x1f9   : > { %1149 = dma.done.wait (%p1043_p0), %s864_s14, 512  }
 0x1fa   : > { %1151 = vsyncadd (%p1043_p0), %s864_s14, 4294966784  ;;  %p18_p1 = scmp.ge.s32.totalorder %s1239_s30, 4   ;;  %s1544_s24 = smov %s1158_s25 }
 0x1fb   : > { %s1545_s25 = smov %s1162_s26  ;;  %s1546_s26 = smov %s1251_s10 }
 0x1fc   : > { %s1547_s27 = smov %s1239_s30  ;;  %20 = sbr.rel (!%p18_p1) target bundleno = 4 (0x4), region = 131 }
 0x201   :  { %869 = vsyncpa [#allocation3], 1 }
 0x202   :  { %871 = vsyncpa [#allocation3 + $0x1], 1 }
 0x203   :  { %872 = vsyncpa [#allocation4], 1 }
 0x204   :  { %874 = vsyncpa [#allocation4 + $0x1], 1 }

</bundles_post_ra>
